<compile_context>
chip_gen: v5e
topology: v5e:2x2
jax: 0.10.0
libtpu: 0.0.40
codegen_flags: <defaults>
</compile_context>

<pallas_src>
import jax
import jax.numpy as jnp
from jax.experimental import pallas as pl
from jax.experimental.pallas import tpu as pltpu


def mlp_kernel(x_ref, w1_ref, b1_ref, w2_ref, b2_ref,
               w3_ref, b3_ref, w4r_ref, b4_ref, o_ref):
    """One batch tile: 3 MXU matmuls (default precision) + VPU tail layer."""
    f32 = jnp.float32

    h = jnp.dot(x_ref[...], w1_ref[...], preferred_element_type=f32) + b1_ref[...]
    h = jnp.maximum(h, 0.0)
    h = jnp.dot(h, w2_ref[...], preferred_element_type=f32) + b2_ref[...]
    h = jnp.maximum(h, 0.0)
    h = jnp.dot(h, w3_ref[...], preferred_element_type=f32) + b3_ref[...]
    h = jnp.maximum(h, 0.0)
    # Final (4 -> 1) layer on the VPU (broadcast-multiply + lane reduce).
    # The (tb, 1) -> (1, tb) relayout rides the otherwise-idle XLU slot and
    # yields a lane-dense, unmasked store with a contiguous writeback DMA.
    out = jnp.sum(h * w4r_ref[...], axis=-1, keepdims=True) + b4_ref[...]  # (tb, 1)
    o_ref[...] = out.reshape(1, -1).astype(o_ref.dtype)                    # (1, tb)


def _round_up(n, m):
    return ((n + m - 1) // m) * m


def _lane_pad(d):
    return _round_up(max(1, d), 128)


def _vmem_budget_bytes():
    """Per-kernel VMEM budget.  Uses the real per-core capacity when it can be
    queried (v5e/v6e: 128 MiB, v7x: 64 MiB); otherwise assumes the smallest."""
    phys = 64 * 1024 * 1024
    try:
        phys = int(pltpu.get_tpu_info().vmem_capacity_bytes)
    except Exception:
        pass
    return min(phys // 2, 48 * 1024 * 1024)


def _choose_tile_rows(batch, input_dim, budget_bytes):
    """Largest 128-row-aligned batch tile whose VMEM footprint fits ~75% of
    the budget.  Footprint per row (f32, lane-padded to 128):
      2x x-block (double-buffered) + h1/h2/h3 intermediates + 2x (1,tb) out."""
    per_row = 4 * (2 * _lane_pad(input_dim)                      # x, 2 buffers
                   + _lane_pad(16) + _lane_pad(8) + _lane_pad(4)  # h1, h2, h3
                   + 2 * 8)                                       # out, 2 bufs
    usable = int(budget_bytes * 0.75)     # headroom for compiler scratch
    tb = max(128, (usable // per_row) // 128 * 128)
    tb = min(tb, 16384)                   # per-step overhead already <5% here
    tb = min(tb, _round_up(batch, 128))   # never tile past the batch
    return tb


def my_model_forward(x, params, tile_rows=None):
    """x: (batch, input_dim) f32.  Returns (batch,) f32 (== .squeeze(1))."""
    (w1, b1), (w2, b2), (w3, b3), (w4, b4) = params
    batch, input_dim = x.shape

    budget = _vmem_budget_bytes()
    if tile_rows is None:
        tb = _choose_tile_rows(batch, input_dim, budget)
    else:
        tb = max(128, _round_up(int(tile_rows), 128))

    num_tiles = pl.cdiv(batch, tb)

    # Last-layer weight as a (1, 4) row so the kernel's VPU tail can broadcast
    # it over the batch tile directly (no in-kernel transpose of weights).
    w4r = w4.reshape(1, -1)

    def _const(shape):
        # Resident parameter: constant index_map -> fetched once, reused
        # across every batch tile.
        return pl.BlockSpec(shape, lambda i: (0, 0))

    out = pl.pallas_call(
        mlp_kernel,
        out_shape=jax.ShapeDtypeStruct((num_tiles, tb), jnp.float32),
        grid=(num_tiles,),
        in_specs=[
            # x is streamed; the last (partial) block is boundary-clamped by
            # Pallas, so no jnp.pad HBM copy is needed for ragged batches.
            pl.BlockSpec((tb, input_dim), lambda i: (i, 0)),
            _const(w1.shape), _const(b1.shape),
            _const(w2.shape), _const(b2.shape),
            _const(w3.shape), _const(b3.shape),
            _const(w4r.shape), _const(b4.shape),
        ],
        # Lane-dense output: one (1, tb) row per batch tile.
        out_specs=pl.BlockSpec((1, tb), lambda i: (i, 0)),
        compiler_params=pltpu.CompilerParams(
            dimension_semantics=("parallel",),   # megacore sharding on v7x
            vmem_limit_bytes=int(budget),
        ),
    )(x, w1, b1, w2, b2, w3, b3, w4r, b4)

    # (num_tiles, tb) -> flat, drop rows past the real batch (== squeeze(1)).
    return out.reshape(-1)[:batch]


def init_params(key, input_dim):
    """Deterministic synthetic params matching nn.Linear shapes.
    Weights kept as (in, out) = transpose of PyTorch's (out, in)."""
    dims = [(input_dim, 16), (16, 8), (8, 4), (4, 1)]
    params = []
    for i, (d_in, d_out) in enumerate(dims):
        kw, kb = jax.random.split(jax.random.fold_in(key, i))
        bound = 1.0 / jnp.sqrt(d_in)
        w = jax.random.uniform(kw, (d_in, d_out), jnp.float32, -bound, bound)
        b = jax.random.uniform(kb, (1, d_out), jnp.float32, -bound, bound)
        params.append((w, b))
    return params


def reference_forward(x, params):
    """Pure-f32 JAX reference matching the PyTorch module's semantics."""
    h = x
    for i, (w, b) in enumerate(params):
        h = jnp.dot(h, w, precision=jax.lax.Precision.HIGHEST) + b
        if i < len(params) - 1:
            h = jnp.maximum(h, 0.0)
    return h[:, 0]


if __name__ == "__main__":
    key = jax.random.PRNGKey(0)
    input_dim = 32
    kx1, kx2, kx3, kp = jax.random.split(key, 4)
    params = init_params(kp, input_dim)

    # Kernel uses default (single-pass bf16-input) MXU precision per the perf
    # review; vs. the f32 reference this costs ~1e-3-level deviation, so the
    # tolerance is 2e-2 (was 1e-5 with precision=HIGHEST).
    tol = dict(atol=2e-2, rtol=2e-2)

    # (a) tiny batch: single partial tile (batch < 128 rows).
    x1 = jax.random.normal(kx1, (8, input_dim), jnp.float32)
    y1 = jax.block_until_ready(my_model_forward(x1, params))
    assert y1.shape == (8,)
    assert jnp.allclose(y1, reference_forward(x1, params), **tol)

    # (b) ragged batch: multi-tile grid with a partial last tile (no jnp.pad).
    x2 = jax.random.normal(kx2, (200, input_dim), jnp.float32)
    y2 = jax.block_until_ready(my_model_forward(x2, params, tile_rows=128))
    assert y2.shape == (200,)
    assert jnp.allclose(y2, reference_forward(x2, params), **tol)

    # (c) batch an exact multiple of the tile: full-block path.
    x3 = jax.random.normal(kx3, (256, input_dim), jnp.float32)
    y3 = jax.block_until_ready(my_model_forward(x3, params, tile_rows=128))
    assert y3.shape == (256,)
    assert jnp.allclose(y3, reference_forward(x3, params), **tol)

    print("KERNEL_OK")
</pallas_src>

<mosaic_0001>
module attributes {stable_mosaic.version = 11 : i64} {
  func.func @mlp_kernel(%arg0: i32, %arg1: memref<128x32xf32, #tpu.memory_space<vmem>>, %arg2: memref<32x16xf32, #tpu.memory_space<vmem>>, %arg3: memref<1x16xf32, #tpu.memory_space<vmem>>, %arg4: memref<16x8xf32, #tpu.memory_space<vmem>>, %arg5: memref<1x8xf32, #tpu.memory_space<vmem>>, %arg6: memref<8x4xf32, #tpu.memory_space<vmem>>, %arg7: memref<1x4xf32, #tpu.memory_space<vmem>>, %arg8: memref<1x4xf32, #tpu.memory_space<vmem>>, %arg9: memref<1x1xf32, #tpu.memory_space<vmem>>, %arg10: memref<1x128xf32, #tpu.memory_space<vmem>>) attributes {dimension_semantics = [#tpu.dimension_semantics<parallel>], iteration_bounds = array<i64: 1>, scalar_prefetch = 0 : i64, scratch_operands = 0 : i64, tpu.core_type = #tpu.core_type<tc>, window_params = [{transform_indices = @transform_0, window_bounds = array<i64: 128, 32>}, {pipeline_mode = #tpu.pipeline_mode<synchronous>, transform_indices = @transform_1, window_bounds = array<i64: 32, 16>}, {pipeline_mode = #tpu.pipeline_mode<synchronous>, transform_indices = @transform_2, window_bounds = array<i64: 1, 16>}, {pipeline_mode = #tpu.pipeline_mode<synchronous>, transform_indices = @transform_3, window_bounds = array<i64: 16, 8>}, {pipeline_mode = #tpu.pipeline_mode<synchronous>, transform_indices = @transform_4, window_bounds = array<i64: 1, 8>}, {pipeline_mode = #tpu.pipeline_mode<synchronous>, transform_indices = @transform_5, window_bounds = array<i64: 8, 4>}, {pipeline_mode = #tpu.pipeline_mode<synchronous>, transform_indices = @transform_6, window_bounds = array<i64: 1, 4>}, {pipeline_mode = #tpu.pipeline_mode<synchronous>, transform_indices = @transform_7, window_bounds = array<i64: 1, 4>}, {pipeline_mode = #tpu.pipeline_mode<synchronous>, transform_indices = @transform_8, window_bounds = array<i64: 1, 1>}, {transform_indices = @transform_9, window_bounds = array<i64: 1, 128>}]} {
    %c0 = arith.constant 0 : index
    %c0_0 = arith.constant 0 : index
    %0 = vector.load %arg1[%c0, %c0_0] : memref<128x32xf32, #tpu.memory_space<vmem>>, vector<128x32xf32>
    %c0_1 = arith.constant 0 : index
    %c0_2 = arith.constant 0 : index
    %1 = vector.load %arg2[%c0_1, %c0_2] : memref<32x16xf32, #tpu.memory_space<vmem>>, vector<32x16xf32>
    %cst = arith.constant dense<0.000000e+00> : vector<128x16xf32>
    %2 = tpu.matmul %0, %1, %cst {dimension_numbers = #tpu.dot_dimension_numbers<[1], [0], [0], [1], [0, 0, 1, 1], [], []>} : vector<128x32xf32>, vector<32x16xf32>, vector<128x16xf32> -> vector<128x16xf32>
    %c0_3 = arith.constant 0 : index
    %c0_4 = arith.constant 0 : index
    %3 = vector.load %arg3[%c0_3, %c0_4] : memref<1x16xf32, #tpu.memory_space<vmem>>, vector<1x16xf32>
    %4 = vector.broadcast %3 : vector<1x16xf32> to vector<128x16xf32>
    %5 = arith.addf %2, %4 : vector<128x16xf32>
    %cst_5 = arith.constant 0.000000e+00 : f32
    %6 = vector.broadcast %cst_5 : f32 to vector<128x16xf32>
    %7 = arith.maximumf %5, %6 : vector<128x16xf32>
    %c0_6 = arith.constant 0 : index
    %c0_7 = arith.constant 0 : index
    %8 = vector.load %arg4[%c0_6, %c0_7] : memref<16x8xf32, #tpu.memory_space<vmem>>, vector<16x8xf32>
    %cst_8 = arith.constant dense<0.000000e+00> : vector<128x8xf32>
    %9 = tpu.matmul %7, %8, %cst_8 {dimension_numbers = #tpu.dot_dimension_numbers<[1], [0], [0], [1], [0, 0, 1, 1], [], []>} : vector<128x16xf32>, vector<16x8xf32>, vector<128x8xf32> -> vector<128x8xf32>
    %c0_9 = arith.constant 0 : index
    %c0_10 = arith.constant 0 : index
    %10 = vector.load %arg5[%c0_9, %c0_10] : memref<1x8xf32, #tpu.memory_space<vmem>>, vector<1x8xf32>
    %11 = vector.broadcast %10 : vector<1x8xf32> to vector<128x8xf32>
    %12 = arith.addf %9, %11 : vector<128x8xf32>
    %cst_11 = arith.constant 0.000000e+00 : f32
    %13 = vector.broadcast %cst_11 : f32 to vector<128x8xf32>
    %14 = arith.maximumf %12, %13 : vector<128x8xf32>
    %c0_12 = arith.constant 0 : index
    %c0_13 = arith.constant 0 : index
    %15 = vector.load %arg6[%c0_12, %c0_13] : memref<8x4xf32, #tpu.memory_space<vmem>>, vector<8x4xf32>
    %cst_14 = arith.constant dense<0.000000e+00> : vector<128x4xf32>
    %16 = tpu.matmul %14, %15, %cst_14 {dimension_numbers = #tpu.dot_dimension_numbers<[1], [0], [0], [1], [0, 0, 1, 1], [], []>} : vector<128x8xf32>, vector<8x4xf32>, vector<128x4xf32> -> vector<128x4xf32>
    %c0_15 = arith.constant 0 : index
    %c0_16 = arith.constant 0 : index
    %17 = vector.load %arg7[%c0_15, %c0_16] : memref<1x4xf32, #tpu.memory_space<vmem>>, vector<1x4xf32>
    %18 = vector.broadcast %17 : vector<1x4xf32> to vector<128x4xf32>
    %19 = arith.addf %16, %18 : vector<128x4xf32>
    %cst_17 = arith.constant 0.000000e+00 : f32
    %20 = vector.broadcast %cst_17 : f32 to vector<128x4xf32>
    %21 = arith.maximumf %19, %20 : vector<128x4xf32>
    %c0_18 = arith.constant 0 : index
    %c0_19 = arith.constant 0 : index
    %22 = vector.load %arg8[%c0_18, %c0_19] : memref<1x4xf32, #tpu.memory_space<vmem>>, vector<1x4xf32>
    %23 = vector.broadcast %22 : vector<1x4xf32> to vector<128x4xf32>
    %24 = arith.mulf %21, %23 : vector<128x4xf32>
    %cst_20 = arith.constant dense<0.000000e+00> : vector<128xf32>
    %25 = vector.multi_reduction <add>, %24, %cst_20 [1] : vector<128x4xf32> to vector<128xf32>
    %26 = vector.shape_cast %25 : vector<128xf32> to vector<128x1xf32>
    %c0_21 = arith.constant 0 : index
    %c0_22 = arith.constant 0 : index
    %27 = vector.load %arg9[%c0_21, %c0_22] : memref<1x1xf32, #tpu.memory_space<vmem>>, vector<1x1xf32>
    %28 = vector.broadcast %27 : vector<1x1xf32> to vector<128x1xf32>
    %29 = arith.addf %26, %28 : vector<128x1xf32>
    %30 = vector.shape_cast %29 : vector<128x1xf32> to vector<1x128xf32>
    %c0_23 = arith.constant 0 : index
    %c0_24 = arith.constant 0 : index
    %31 = vector.load %arg10[%c0_23, %c0_24] : memref<1x128xf32, #tpu.memory_space<vmem>>, vector<1x128xf32>
    tpu.vector_store %arg10[%c0_23, %c0_24], %30 {strides = array<i32>} : memref<1x128xf32, #tpu.memory_space<vmem>>, vector<1x128xf32>,
    return
  }
  func.func @transform_0(%arg0: i32) -> (i32, i32) {
    %c0_i32 = arith.constant 0 : i32
    %c0_i32_0 = arith.constant 0 : i32
    return %arg0, %c0_i32 : i32, i32
  }
  func.func @transform_1(%arg0: i32) -> (i32, i32) {
    %c0_i32 = arith.constant 0 : i32
    %c0_i32_0 = arith.constant 0 : i32
    %c0_i32_1 = arith.constant 0 : i32
    return %c0_i32, %c0_i32_0 : i32, i32
  }
  func.func @transform_2(%arg0: i32) -> (i32, i32) {
    %c0_i32 = arith.constant 0 : i32
    %c0_i32_0 = arith.constant 0 : i32
    %c0_i32_1 = arith.constant 0 : i32
    return %c0_i32, %c0_i32_0 : i32, i32
  }
  func.func @transform_3(%arg0: i32) -> (i32, i32) {
    %c0_i32 = arith.constant 0 : i32
    %c0_i32_0 = arith.constant 0 : i32
    %c0_i32_1 = arith.constant 0 : i32
    return %c0_i32, %c0_i32_0 : i32, i32
  }
  func.func @transform_4(%arg0: i32) -> (i32, i32) {
    %c0_i32 = arith.constant 0 : i32
    %c0_i32_0 = arith.constant 0 : i32
    %c0_i32_1 = arith.constant 0 : i32
    return %c0_i32, %c0_i32_0 : i32, i32
  }
  func.func @transform_5(%arg0: i32) -> (i32, i32) {
    %c0_i32 = arith.constant 0 : i32
    %c0_i32_0 = arith.constant 0 : i32
    %c0_i32_1 = arith.constant 0 : i32
    return %c0_i32, %c0_i32_0 : i32, i32
  }
  func.func @transform_6(%arg0: i32) -> (i32, i32) {
    %c0_i32 = arith.constant 0 : i32
    %c0_i32_0 = arith.constant 0 : i32
    %c0_i32_1 = arith.constant 0 : i32
    return %c0_i32, %c0_i32_0 : i32, i32
  }
  func.func @transform_7(%arg0: i32) -> (i32, i32) {
    %c0_i32 = arith.constant 0 : i32
    %c0_i32_0 = arith.constant 0 : i32
    %c0_i32_1 = arith.constant 0 : i32
    return %c0_i32, %c0_i32_0 : i32, i32
  }
  func.func @transform_8(%arg0: i32) -> (i32, i32) {
    %c0_i32 = arith.constant 0 : i32
    %c0_i32_0 = arith.constant 0 : i32
    %c0_i32_1 = arith.constant 0 : i32
    return %c0_i32, %c0_i32_0 : i32, i32
  }
  func.func @transform_9(%arg0: i32) -> (i32, i32) {
    %c0_i32 = arith.constant 0 : i32
    %c0_i32_0 = arith.constant 0 : i32
    return %arg0, %c0_i32 : i32, i32
  }
}

</mosaic_0001>

<bundles_post_ra>
// kernel: tpu_custom_call.1
= control target key start
LH: loop header
LB: loop body
LE: loop exit
PB: predicated region body
PF: predicated region fallthrough
CT: control target
= control target key end

     0   :  { %s1078_s0 = inlined_call_operand.vmem [shape: f32[8,32], index: 0, kind: input, shape index: {}]   ;;  %s1079_s1 = inlined_call_operand.vmem [shape: f32[32,16], index: 1, kind: input, shape index: {}]   ;;  %s1080_s2 = inlined_call_operand.vmem [shape: f32[1,16], index: 2, kind: input, shape index: {}]   ;;  %s1081_s3 = inlined_call_operand.vmem [shape: f32[16,8], index: 3, kind: input, shape index: {}]   ;;  %s1082_s4 = inlined_call_operand.vmem [shape: f32[1,8], index: 4, kind: input, shape index: {}]   ;;  %s1083_s5 = inlined_call_operand.vmem [shape: f32[8,4], index: 5, kind: input, shape index: {}]   ;;  %s1084_s6 = inlined_call_operand.vmem [shape: f32[1,4], index: 6, kind: input, shape index: {}]   ;;  %s1085_s7 = inlined_call_operand.vmem [shape: f32[1,4], index: 7, kind: input, shape index: {}]   ;;  %s1086_s8 = inlined_call_operand.<no memory space> [shape: f32[1,1], index: 8, kind: input, shape index: {}]   ;;  %s1087_s9 = inlined_call_operand.hbm [shape: f32[1,128], index: 9, kind: output, shape index: {}]  }
   0x1   :  { %v14_v0 = vstv %s1086_s8 }
   0x2   :  { %15 = vst [vmem:[#allocation2] sm:$0x1] %v14_v0 }
   0x3   :  { %v54_v1 = vld [vmem:[%s1079_s1 + $0x18] sm:$0xff]  ;;  %v53_v2 = vld [vmem:[%s1079_s1 + $0x10] sm:$0xff]  ;;  %v52_v3 = vld [vmem:[%s1079_s1 + $0x8] sm:$0xff]  ;;  %vm59_vm0 = vcmask 261120  }
   0x4   :  { %120 = vmatpush.msra.mxu0 %v54_v1  ;;  %742 = vmatpush.msra.mxu3 %v54_v1  ;;  %v51_v4 = vld [vmem:[%s1079_s1] sm:$0xff] }
   0x5   :  { %v35_v5 = vld [vmem:[%s1078_s0] sm:$0xff] }
   0x6   :  { %121 = vmatpush.msra.mxu0 %v53_v2  ;;  %743 = vmatpush.msra.mxu3 %v53_v2  ;;  %v47_v6 = vld [vmem:[%s1078_s0 + $0x60] sm:$0xff] }
   0x8   :  { %122 = vmatpush.msra.mxu0 %v52_v3  ;;  %744 = vmatpush.msra.mxu3 %v52_v3 }
   0x9   :  { %16 = vsyncpa [#allocation4], 0  ;;  %v36_v7 = vld [vmem:[%s1078_s0 + $0x8] sm:$0xff]  ;;  %v37_v9 = vld [vmem:[%s1078_s0 + $0x10] sm:$0xff]  ;;  %vm195_vm1 = vcmask 130048   ;;  %vm330_vm2 = vcmask 64512  }
   0xa   :  { %123 = vmatpush.msra.mxu0 %v51_v4  ;;  %745 = vmatpush.msra.mxu3 %v51_v4  ;;  %v48_v8 = vld [vmem:[%s1078_s0 + $0x68] sm:$0xff]  ;;  %v49_v10 = vld [vmem:[%s1078_s0 + $0x70] sm:$0xff]  ;;  %v38_v11 = vld [vmem:[%s1078_s0 + $0x18] sm:$0xff]  ;;  %vm480_vm3 = vcmask 31744   ;;  %vm618_vm4 = vcmask 130112   ;;  %vm622_vm5 = vcmask 195712  }
   0xb   :  { %694 = vmatmul.msk.f32.vlgmr.msra.gmra.mxu0 %vm59_vm0, %v35_v5  ;;  %706 = vmatmul.msk.f32.vlgmr.msra.gmra.mxu3 %vm59_vm0, %v47_v6  ;;  %v50_v12 = vld [vmem:[%s1078_s0 + $0x78] sm:$0xff]  ;;  %v39_v13 = vld [vmem:[%s1078_s0 + $0x20] sm:$0xff]  ;;  %v40_v14 = vld [vmem:[%s1078_s0 + $0x28] sm:$0xff]  ;;  %vm626_vm6 = vcmask 261312   ;;  %vm630_vm7 = vcmask 326912   ;;  %vm634_vm8 = vcmask 392512  }
   0xc   :  { %v41_v15 = vld [vmem:[%s1078_s0 + $0x30] sm:$0xff]  ;;  %v42_v16 = vld [vmem:[%s1078_s0 + $0x38] sm:$0xff]  ;;  %v43_v17 = vld [vmem:[%s1078_s0 + $0x40] sm:$0xff]  ;;  %vm638_vm9 = vcmask 458112   ;;  %vm642_vm10 = vcmask 523712   ;;  %vm646_vm11 = vcmask 589312  }
   0xd   :  { %v44_v18 = vld [vmem:[%s1078_s0 + $0x48] sm:$0xff]  ;;  %v45_v19 = vld [vmem:[%s1078_s0 + $0x50] sm:$0xff]  ;;  %v46_v20 = vld [vmem:[%s1078_s0 + $0x58] sm:$0xff]  ;;  %vm650_vm12 = vcmask 654912   ;;  %vm654_vm13 = vcmask 720512   ;;  %vm658_vm14 = vcmask 786112  }
   0xe   :  { %v190_v21 = vld [vmem:[%s1081_s3 + $0x8] sm:$0xff]  ;;  %v189_v22 = vld [vmem:[%s1081_s3] sm:$0xff]  ;;  %vm662_vm15 = vcmask 851712   ;;  %s685_s16 = sshll.u32 %s1087_s9, 4  ;;  %s686_s16 = int_to_ptr.hbm [resolvable:$true] %s685_s16 }
   0xf   :  { %258 = vmatpush.msra.mxu1 %v190_v21  ;;  %746 = vmatpush.msrb.mxu3 %v190_v21  ;;  %v925_v23 = vld [vmem:[%s1080_s2] ss:$0 sm:$0xff] }
  0x11   :  { %259 = vmatpush.msra.mxu1 %v189_v22  ;;  %747 = vmatpush.msrb.mxu3 %v189_v22 }
  0x13   :  { %695 = vmatmul.msk.f32.gmra.mxu0 %vm59_vm0, %v36_v7  ;;  %707 = vmatmul.msk.f32.gmra.mxu3 %vm59_vm0, %v48_v8  ;;  %v325_v8 = vld [vmem:[%s1083_s5] sm:$0xff] }
  0x14   :  { %394 = vmatpush.msra.mxu2 %v325_v8  ;;  %748 = vmatpush.msra.mxu3 %v325_v8 }
  0x1b   :  { %696 = vmatmul.msk.f32.gmra.mxu0 %vm59_vm0, %v37_v9  ;;  %708 = vmatmul.msk.f32.gmra.mxu3 %vm59_vm0, %v49_v10  ;;  %v965_v9 = vld [vmem:[%s1082_s4] ss:$0 sm:$0xff] }
  0x23   :  { %697 = vmatmul.msk.f32.gmra.mxu0 %vm59_vm0, %v38_v11  ;;  %709 = vmatmul.msk.f32.gmra.mxu3 %vm59_vm0, %v50_v12 }
  0x2b   :  { %698 = vmatmul.msk.f32.gmra.mxu0 %vm59_vm0, %v39_v13 }
  0x33   :  { %699 = vmatmul.msk.f32.gmra.mxu0 %vm59_vm0, %v40_v14 }
  0x3b   :  { %700 = vmatmul.msk.f32.gmra.mxu0 %vm59_vm0, %v41_v15 }
  0x43   :  { %701 = vmatmul.msk.f32.gmra.mxu0 %vm59_vm0, %v42_v16 }
  0x4b   :  { %702 = vmatmul.msk.f32.gmra.mxu0 %vm59_vm0, %v43_v17 }
  0x53   :  { %703 = vmatmul.msk.f32.gmra.mxu0 %vm59_vm0, %v44_v18 }
  0x5b   :  { %704 = vmatmul.msk.f32.gmra.mxu0 %vm59_vm0, %v45_v19 }
  0x63   :  { %705 = vmatmul.msk.f32.gmra.mxu0 %vm59_vm0, %v46_v20  ;;  %vm666_vm0 = vcmask 917312  }
  0x88   :  { %v125_v24 = vpop.f32.mrf.mxu0 }
  0x89   :  { %v126_v25 = vadd.f32 %v925_v23, %v125_v24 }
  0x8b   :  { %v173_v26 = vmax.f32 %v126_v25, 0.0 }
  0x8d   :  { %710 = vmatmul.msk.f32.vlgmr.msra.gmra.mxu1 %vm195_vm1, %v173_v26 }
  0x8e   :  { %v161_v27 = vpop.f32.mrf.mxu3 }
  0x8f   :  { %v162_v6 = vadd.f32 %v925_v23, %v161_v27 }
  0x90   :  { %v128_v28 = vpop.f32.mrf.mxu0 }
  0x91   :  { %v129_v29 = vadd.f32 %v925_v23, %v128_v28  ;;  %v185_v7 = vmax.f32 %v162_v6, 0.0 }
  0x93   :  { %v174_v30 = vmax.f32 %v129_v29, 0.0 }
  0x95   :  { %711 = vmatmul.msk.f32.gmra.mxu1 %vm195_vm1, %v174_v30 }
  0x96   :  { %v164_v31 = vpop.f32.mrf.mxu3 }
  0x97   :  { %v165_v32 = vadd.f32 %v925_v23, %v164_v31 }
  0x98   :  { %v131_v33 = vpop.f32.mrf.mxu0 }
  0x99   :  { %v186_v34 = vmax.f32 %v165_v32, 0.0  ;;  %v132_v35 = vadd.f32 %v925_v23, %v131_v33 }
  0x9b   :  { %v175_v36 = vmax.f32 %v132_v35, 0.0  ;;  %723 = vmatmul.msk.f32.vlgmr.msrb.gmra.mxu3 %vm195_vm1, %v186_v34 }
  0x9d   :  { %712 = vmatmul.msk.f32.gmra.mxu1 %vm195_vm1, %v175_v36 }
  0x9e   :  { %v167_v37 = vpop.f32.mrf.mxu3 }
  0x9f   :  { %v168_v38 = vadd.f32 %v925_v23, %v167_v37 }
  0xa0   :  { %v134_v39 = vpop.f32.mrf.mxu0 }
  0xa1   :  { %v187_v40 = vmax.f32 %v168_v38, 0.0  ;;  %v135_v41 = vadd.f32 %v925_v23, %v134_v39 }
  0xa3   :  { %v176_v42 = vmax.f32 %v135_v41, 0.0  ;;  %724 = vmatmul.msk.f32.gmra.mxu3 %vm195_vm1, %v187_v40 }
  0xa5   :  { %713 = vmatmul.msk.f32.gmra.mxu1 %vm195_vm1, %v176_v42 }
  0xa6   :  { %v170_v43 = vpop.f32.mrf.mxu3 }
  0xa7   :  { %v171_v44 = vadd.f32 %v925_v23, %v170_v43 }
  0xa8   :  { %v137_v45 = vpop.f32.mrf.mxu0 }
  0xa9   :  { %v138_v46 = vadd.f32 %v925_v23, %v137_v45  ;;  %v188_v47 = vmax.f32 %v171_v44, 0.0 }
  0xab   :  { %v177_v48 = vmax.f32 %v138_v46, 0.0  ;;  %725 = vmatmul.msk.f32.gmra.mxu3 %vm195_vm1, %v188_v47 }
  0xad   :  { %714 = vmatmul.msk.f32.gmra.mxu1 %vm195_vm1, %v177_v48 }
  0xb0   :  { %v140_v49 = vpop.f32.mrf.mxu0 }
  0xb1   :  { %v141_v50 = vadd.f32 %v925_v23, %v140_v49 }
  0xb3   :  { %v178_v51 = vmax.f32 %v141_v50, 0.0 }
  0xb5   :  { %715 = vmatmul.msk.f32.gmra.mxu1 %vm195_vm1, %v178_v51 }
  0xb8   :  { %v143_v52 = vpop.f32.mrf.mxu0 }
  0xb9   :  { %v144_v53 = vadd.f32 %v925_v23, %v143_v52 }
  0xbb   :  { %v179_v54 = vmax.f32 %v144_v53, 0.0 }
  0xbd   :  { %716 = vmatmul.msk.f32.gmra.mxu1 %vm195_vm1, %v179_v54 }
  0xc0   :  { %v146_v55 = vpop.f32.mrf.mxu0 }
  0xc1   :  { %v147_v56 = vadd.f32 %v925_v23, %v146_v55 }
  0xc3   :  { %v180_v57 = vmax.f32 %v147_v56, 0.0 }
  0xc5   :  { %717 = vmatmul.msk.f32.gmra.mxu1 %vm195_vm1, %v180_v57 }
  0xc8   :  { %v149_v58 = vpop.f32.mrf.mxu0 }
  0xc9   :  { %v150_v59 = vadd.f32 %v925_v23, %v149_v58  ;;  %v1002_v58 = vld [vmem:[%s1084_s6] ss:$0 sm:$0xff]  ;;  %s786_s6 = smov [#allocation3]  }
  0xcb   :  { %v181_v60 = vmax.f32 %v150_v59, 0.0 }
  0xcd   :  { %718 = vmatmul.msk.f32.gmra.mxu1 %vm195_vm1, %v181_v60 }
  0xd0   :  { %v152_v61 = vpop.f32.mrf.mxu0 }
  0xd1   :  { %v153_v62 = vadd.f32 %v925_v23, %v152_v61  ;;  %v1008_v61 = vld [vmem:[%s1085_s7] ss:$0 sm:$0xff]  ;;  %s683_s7 = sshll.u32 %s786_s6, 4  ;;  %s684_s7 = int_to_ptr.vmem [resolvable:$true] %s683_s7 }
  0xd3   :  { %v182_v63 = vmax.f32 %v153_v62, 0.0 }
  0xd5   :  { %719 = vmatmul.msk.f32.gmra.mxu1 %vm195_vm1, %v182_v63 }
  0xd8   :  { %v155_v0 = vpop.f32.mrf.mxu0 }
  0xd9   :  { %v156_v1 = vadd.f32 %v925_v23, %v155_v0 }
  0xdb   :  { %v183_v2 = vmax.f32 %v156_v1, 0.0 }
  0xdd   :  { %720 = vmatmul.msk.f32.gmra.mxu1 %vm195_vm1, %v183_v2 }
  0xe0   :  { %v158_v3 = vpop.f32.mrf.mxu0 }
  0xe1   :  { %v159_v4 = vadd.f32 %v925_v23, %v158_v3 }
  0xe3   :  { %v184_v5 = vmax.f32 %v159_v4, 0.0 }
  0xe5   :  { %721 = vmatmul.msk.f32.gmra.mxu1 %vm195_vm1, %v184_v5 }
  0xed   :  { %722 = vmatmul.msk.f32.gmra.mxu1 %vm195_vm1, %v185_v7  ;;  %vm670_vm1 = vcmask 982912  }
 0x10a   :  { %v261_v10 = vpop.f32.mrf.mxu1 }
 0x10b   :  { %v262_v11 = vadd.f32 %v965_v9, %v261_v10 }
 0x10d   :  { %v309_v12 = vmax.f32 %v262_v11, 0.0 }
 0x10f   :  { %726 = vmatmul.msk.f32.vlgmr.msra.gmra.mxu2 %vm330_vm2, %v309_v12 }
 0x112   :  { %v264_v13 = vpop.f32.mrf.mxu1 }
 0x113   :  { %v265_v14 = vadd.f32 %v965_v9, %v264_v13 }
 0x115   :  { %v310_v15 = vmax.f32 %v265_v14, 0.0 }
 0x117   :  { %727 = vmatmul.msk.f32.gmra.mxu2 %vm330_vm2, %v310_v15 }
 0x11a   :  { %v267_v16 = vpop.f32.mrf.mxu1 }
 0x11b   :  { %v268_v17 = vadd.f32 %v965_v9, %v267_v16 }
 0x11d   :  { %v311_v18 = vmax.f32 %v268_v17, 0.0 }
 0x11e   :  { %v300_v19 = vpop.f32.mrf.mxu3 }
 0x11f   :  { %v301_v20 = vadd.f32 %v965_v9, %v300_v19  ;;  %728 = vmatmul.msk.f32.gmra.mxu2 %vm330_vm2, %v311_v18 }
 0x121   :  { %v322_v21 = vmax.f32 %v301_v20, 0.0 }
 0x122   :  { %v270_v22 = vpop.f32.mrf.mxu1 }
 0x123   :  { %v271_v23 = vadd.f32 %v965_v9, %v270_v22  ;;  %739 = vmatmul.msk.f32.vlgmr.msra.gmra.mxu3 %vm330_vm2, %v322_v21 }
 0x125   :  { %v312_v24 = vmax.f32 %v271_v23, 0.0 }
 0x126   :  { %v303_v25 = vpop.f32.mrf.mxu3 }
 0x127   :  { %v304_v26 = vadd.f32 %v965_v9, %v303_v25  ;;  %729 = vmatmul.msk.f32.gmra.mxu2 %vm330_vm2, %v312_v24 }
 0x129   :  { %v323_v27 = vmax.f32 %v304_v26, 0.0 }
 0x12a   :  { %v273_v28 = vpop.f32.mrf.mxu1 }
 0x12b   :  { %v274_v29 = vadd.f32 %v965_v9, %v273_v28  ;;  %740 = vmatmul.msk.f32.gmra.mxu3 %vm330_vm2, %v323_v27 }
 0x12d   :  { %v313_v30 = vmax.f32 %v274_v29, 0.0 }
 0x12e   :  { %v306_v31 = vpop.f32.mrf.mxu3 }
 0x12f   :  { %730 = vmatmul.msk.f32.gmra.mxu2 %vm330_vm2, %v313_v30  ;;  %v307_v32 = vadd.f32 %v965_v9, %v306_v31 }
 0x131   :  { %v324_v33 = vmax.f32 %v307_v32, 0.0 }
 0x132   :  { %v276_v34 = vpop.f32.mrf.mxu1 }
 0x133   :  { %v277_v35 = vadd.f32 %v965_v9, %v276_v34  ;;  %741 = vmatmul.msk.f32.gmra.mxu3 %vm330_vm2, %v324_v33 }
 0x135   :  { %v314_v36 = vmax.f32 %v277_v35, 0.0 }
 0x137   :  { %731 = vmatmul.msk.f32.gmra.mxu2 %vm330_vm2, %v314_v36 }
 0x13a   :  { %v279_v37 = vpop.f32.mrf.mxu1 }
 0x13b   :  { %v280_v38 = vadd.f32 %v965_v9, %v279_v37 }
 0x13d   :  { %v315_v39 = vmax.f32 %v280_v38, 0.0 }
 0x13f   :  { %732 = vmatmul.msk.f32.gmra.mxu2 %vm330_vm2, %v315_v39 }
 0x142   :  { %v282_v40 = vpop.f32.mrf.mxu1 }
 0x143   :  { %v283_v41 = vadd.f32 %v965_v9, %v282_v40 }
 0x145   :  { %v316_v42 = vmax.f32 %v283_v41, 0.0 }
 0x147   :  { %733 = vmatmul.msk.f32.gmra.mxu2 %vm330_vm2, %v316_v42 }
 0x14a   :  { %v285_v43 = vpop.f32.mrf.mxu1 }
 0x14b   :  { %v286_v44 = vadd.f32 %v965_v9, %v285_v43 }
 0x14d   :  { %v317_v45 = vmax.f32 %v286_v44, 0.0 }
 0x14f   :  { %734 = vmatmul.msk.f32.gmra.mxu2 %vm330_vm2, %v317_v45 }
 0x152   :  { %v288_v46 = vpop.f32.mrf.mxu1 }
 0x153   :  { %v289_v47 = vadd.f32 %v965_v9, %v288_v46 }
 0x155   :  { %v318_v48 = vmax.f32 %v289_v47, 0.0 }
 0x157   :  { %735 = vmatmul.msk.f32.gmra.mxu2 %vm330_vm2, %v318_v48 }
 0x15a   :  { %v291_v49 = vpop.f32.mrf.mxu1 }
 0x15b   :  { %v292_v50 = vadd.f32 %v965_v9, %v291_v49 }
 0x15d   :  { %v319_v51 = vmax.f32 %v292_v50, 0.0 }
 0x15f   :  { %736 = vmatmul.msk.f32.gmra.mxu2 %vm330_vm2, %v319_v51 }
 0x162   :  { %v294_v52 = vpop.f32.mrf.mxu1 }
 0x163   :  { %v295_v53 = vadd.f32 %v965_v9, %v294_v52 }
 0x165   :  { %v320_v54 = vmax.f32 %v295_v53, 0.0 }
 0x167   :  { %737 = vmatmul.msk.f32.gmra.mxu2 %vm330_vm2, %v320_v54 }
 0x16a   :  { %v297_v55 = vpop.f32.mrf.mxu1 }
 0x16b   :  { %v298_v56 = vadd.f32 %v965_v9, %v297_v55 }
 0x16d   :  { %v321_v57 = vmax.f32 %v298_v56, 0.0 }
 0x16f   :  { %738 = vmatmul.msk.f32.gmra.mxu2 %vm330_vm2, %v321_v57  ;;  %vm674_vm2 = vcmask 1048512  }
 0x192   :  { %v396_v59 = vpop.f32.mrf.mxu2 }
 0x193   :  { %v397_v60 = vadd.f32 %v1002_v58, %v396_v59 }
 0x195   :  { %v444_v62 = vmax.f32 %v397_v60, 0.0 }
 0x197   :  { %v464_v63 = vmul.f32 %v1008_v61, %v444_v62 }
 0x199   :  { %v481_v0 = vsel %vm480_vm3, %v464_v63, 0.0 }
 0x19a   :  { %v399_v1 = vpop.f32.mrf.mxu2  ;;  %482 = vadd.xlane.f32.xlu0 %v481_v0 }
 0x19b   :  { %v400_v2 = vadd.f32 %v1002_v58, %v399_v1 }
 0x19d   :  { %v445_v3 = vmax.f32 %v400_v2, 0.0 }
 0x19f   :  { %v465_v4 = vmul.f32 %v1008_v61, %v445_v3 }
 0x1a1   :  { %v484_v5 = vsel %vm480_vm3, %v465_v4, 0.0 }
 0x1a2   :  { %v402_v6 = vpop.f32.mrf.mxu2  ;;  %485 = vadd.xlane.f32.xlu0 %v484_v5 }
 0x1a3   :  { %v403_v7 = vadd.f32 %v1002_v58, %v402_v6 }
 0x1a5   :  { %v446_v8 = vmax.f32 %v403_v7, 0.0 }
 0x1a6   :  { %v435_v9 = vpop.f32.mrf.mxu3 }
 0x1a7   :  { %v436_v10 = vadd.f32 %v1002_v58, %v435_v9  ;;  %v466_v11 = vmul.f32 %v1008_v61, %v446_v8  ;;  %v785_v8 = vmov 0  }
 0x1a8   :  { %751 = vset.pattern.permute.xlu1 %v785_v8  ;;  %752 = vset.pattern.permute.xlu2 %v785_v8 }
 0x1a9   :  { %v457_v12 = vmax.f32 %v436_v10, 0.0  ;;  %v487_v13 = vsel %vm480_vm3, %v466_v11, 0.0  ;;  %753 = vset.pattern.permute.xlu0 %v785_v8 }
 0x1aa   :  { %v405_v14 = vpop.f32.mrf.mxu2  ;;  %488 = vadd.xlane.f32.xlu1 %v487_v13 }
 0x1ab   :  { %v477_v15 = vmul.f32 %v1008_v61, %v457_v12  ;;  %v406_v16 = vadd.f32 %v1002_v58, %v405_v14 }
 0x1ad   :  { %v520_v19 = vsel %vm480_vm3, %v477_v15, 0.0  ;;  %v447_v20 = vmax.f32 %v406_v16, 0.0  ;;  %v758_v15 = vld [vmem:[#allocation2] ss:$0 sm:$0xff] }
 0x1ae   :  { %v438_v17 = vpop.f32.mrf.mxu3 }
 0x1af   :  { %v439_v18 = vadd.f32 %v1002_v58, %v438_v17  ;;  %v467_v27 = vmul.f32 %v1008_v61, %v447_v20 }
 0x1b1   :  { %v458_v21 = vmax.f32 %v439_v18, 0.0  ;;  %v490_v31 = vsel %vm480_vm3, %v467_v27, 0.0 }
 0x1b2   :  { %v408_v22 = vpop.f32.mrf.mxu2  ;;  %521 = vadd.xlane.f32.xlu1 %v520_v19 }
 0x1b3   :  { %v409_v23 = vadd.f32 %v1002_v58, %v408_v22  ;;  %v478_v24 = vmul.f32 %v1008_v61, %v458_v21 }
 0x1b5   :  { %v448_v25 = vmax.f32 %v409_v23, 0.0  ;;  %v523_v26 = vsel %vm480_vm3, %v478_v24, 0.0 }
 0x1b6   :  { %524 = vadd.xlane.f32.xlu2 %v523_v26  ;;  %v441_v28 = vpop.f32.mrf.mxu3 }
 0x1b7   :  { %v442_v29 = vadd.f32 %v1002_v58, %v441_v28  ;;  %v468_v32 = vmul.f32 %v1008_v61, %v448_v25 }
 0x1b9   :  { %v459_v30 = vmax.f32 %v442_v29, 0.0  ;;  %v493_v37 = vsel %vm480_vm3, %v468_v32, 0.0 }
 0x1ba   :  { %v411_v33 = vpop.f32.mrf.mxu2  ;;  %491 = vadd.xlane.f32.xlu1 %v490_v31 }
 0x1bb   :  { %v412_v34 = vadd.f32 %v1002_v58, %v411_v33  ;;  %v479_v35 = vmul.f32 %v1008_v61, %v459_v30 }
 0x1bd   :  { %v449_v36 = vmax.f32 %v412_v34, 0.0  ;;  %v526_v38 = vsel %vm480_vm3, %v479_v35, 0.0 }
 0x1be   :  { %494 = vadd.xlane.f32.xlu2 %v493_v37  ;;  %527 = vadd.xlane.f32.xlu0 %v526_v38 }
 0x1bf   :  { %v469_v39 = vmul.f32 %v1008_v61, %v449_v36 }
 0x1c1   :  { %v496_v43 = vsel %vm480_vm3, %v469_v39, 0.0 }
 0x1c2   :  { %v414_v40 = vpop.f32.mrf.mxu2 }
 0x1c3   :  { %v415_v41 = vadd.f32 %v1002_v58, %v414_v40 }
 0x1c5   :  { %v450_v42 = vmax.f32 %v415_v41, 0.0 }
 0x1c6   :  { %497 = vadd.xlane.f32.xlu2 %v496_v43 }
 0x1c7   :  { %v470_v44 = vmul.f32 %v1008_v61, %v450_v42 }
 0x1c9   :  { %v499_v45 = vsel %vm480_vm3, %v470_v44, 0.0 }
 0x1ca   :  { %v417_v46 = vpop.f32.mrf.mxu2  ;;  %500 = vadd.xlane.f32.xlu0 %v499_v45 }
 0x1cb   :  { %v418_v47 = vadd.f32 %v1002_v58, %v417_v46 }
 0x1cd   :  { %v451_v48 = vmax.f32 %v418_v47, 0.0 }
 0x1cf   :  { %v471_v49 = vmul.f32 %v1008_v61, %v451_v48 }
 0x1d1   :  { %v502_v50 = vsel %vm480_vm3, %v471_v49, 0.0  ;;  %v613_v49 = vlaneseq }
 0x1d2   :  { %v420_v51 = vpop.f32.mrf.mxu2  ;;  %503 = vadd.xlane.f32.xlu1 %v502_v50 }
 0x1d3   :  { %v421_v52 = vadd.f32 %v1002_v58, %v420_v51  ;;  %v1057_v51 = vand.u32 127, %v613_v49 }
 0x1d5   :  { %v452_v53 = vmax.f32 %v421_v52, 0.0 }
 0x1d7   :  { %v472_v54 = vmul.f32 %v1008_v61, %v452_v53  ;;  %v620_v53 = vadd.s32 4294967280, %v1057_v51 }
 0x1d9   :  { %v505_v55 = vsel %vm480_vm3, %v472_v54, 0.0  ;;  %v616_v54 = vadd.s32 4294967288, %v1057_v51 }
 0x1da   :  { %v423_v56 = vpop.f32.mrf.mxu2  ;;  %506 = vadd.xlane.f32.xlu2 %v505_v55 }
 0x1db   :  { %v424_v57 = vadd.f32 %v1002_v58, %v423_v56 }
 0x1dd   :  { %v453_v59 = vmax.f32 %v424_v57, 0.0 }
 0x1df   :  { %v473_v60 = vmul.f32 %v1008_v61, %v453_v59 }
 0x1e1   :  { %v508_v62 = vsel %vm480_vm3, %v473_v60, 0.0  ;;  %v628_v60 = vadd.s32 4294967264, %v1057_v51 }
 0x1e2   :  { %v426_v63 = vpop.f32.mrf.mxu2  ;;  %509 = vadd.xlane.f32.xlu0 %v508_v62 }
 0x1e3   :  { %v427_v0 = vadd.f32 %v1002_v58, %v426_v63  ;;  %v624_v63 = vadd.s32 4294967272, %v1057_v51 }
 0x1e5   :  { %v454_v1 = vmax.f32 %v427_v0, 0.0 }
 0x1e7   :  { %v474_v2 = vmul.f32 %v1008_v61, %v454_v1 }
 0x1e9   :  { %v511_v3 = vsel %vm480_vm3, %v474_v2, 0.0 }
 0x1ea   :  { %v429_v4 = vpop.f32.mrf.mxu2  ;;  %512 = vadd.xlane.f32.xlu1 %v511_v3 }
 0x1eb   :  { %v430_v5 = vadd.f32 %v1002_v58, %v429_v4  ;;  %v636_v4 = vadd.s32 4294967248, %v1057_v51 }
 0x1ed   :  { %v455_v6 = vmax.f32 %v430_v5, 0.0 }
 0x1ef   :  { %v475_v7 = vmul.f32 %v1008_v61, %v455_v6  ;;  %v632_v6 = vadd.s32 4294967256, %v1057_v51 }
 0x1f1   :  { %v514_v9 = vsel %vm480_vm3, %v475_v7, 0.0 }
 0x1f2   :  { %v432_v10 = vpop.f32.mrf.mxu2  ;;  %515 = vadd.xlane.f32.xlu2 %v514_v9 }
 0x1f3   :  { %v433_v11 = vadd.f32 %v1002_v58, %v432_v10 }
 0x1f5   :  { %v456_v12 = vmax.f32 %v433_v11, 0.0  ;;  %v644_v11 = vadd.s32 4294967232, %v1057_v51 }
 0x1f7   :  { %v476_v13 = vmul.f32 %v1008_v61, %v456_v12 }
 0x1f9   :  { %v517_v14 = vsel %vm480_vm3, %v476_v13, 0.0  ;;  %v640_v13 = vadd.s32 4294967240, %v1057_v51 }
 0x1fa   :  { %518 = vadd.xlane.f32.xlu0 %v517_v14  ;;  %v648_v14 = vadd.s32 4294967224, %v1057_v51 }
 0x20d   :  { %v483_v16 = vpop.xlane.xlu0 %482 }
 0x20e   :  { %v533_v17 = vadd.f32 %v758_v15, %v483_v16 }
 0x210   :  { %566 = vperm.xlu1 %751, %v533_v17  }
 0x215   :  { %v486_v18 = vpop.xlane.xlu0 %485 }
 0x216   :  { %v534_v19 = vadd.f32 %v758_v15, %v486_v18 }
 0x218   :  { %569 = vperm.xlu2 %752, %v534_v19  }
 0x21d   :  { %v489_v20 = vpop.xlane.xlu1 %488 }
 0x21e   :  { %v535_v21 = vadd.f32 %v758_v15, %v489_v20 }
 0x220   :  { %572 = vperm.xlu0 %753, %v535_v21  }
 0x225   :  { %v522_v22 = vpop.xlane.xlu1 %521 }
 0x226   :  { %v546_v40 = vadd.f32 %v758_v15, %v522_v22  ;;  %v656_v22 = vadd.s32 4294967208, %v1057_v51 }
 0x229   :  { %v525_v23 = vpop.xlane.xlu2 %524 }
 0x22a   :  { %v547_v43 = vadd.f32 %v758_v15, %v525_v23 }
 0x22d   :  { %v492_v24 = vpop.xlane.xlu1 %491 }
 0x22e   :  { %v536_v58 = vadd.f32 %v758_v15, %v492_v24  ;;  %v652_v24 = vadd.s32 4294967216, %v1057_v51 }
 0x230   :  { %575 = vperm.xlu2 %752, %v536_v58  }
 0x231   :  { %v495_v25 = vpop.xlane.xlu2 %494  ;;  %v528_v26 = vpop.xlane.xlu0 %527 }
 0x232   :  { %v537_v61 = vadd.f32 %v758_v15, %v495_v25  ;;  %v548_v45 = vadd.f32 %v758_v15, %v528_v26  ;;  %v660_v25 = vadd.s32 4294967200, %v1057_v51 }
 0x234   :  { %578 = vperm.xlu1 %751, %v537_v61  }
 0x239   :  { %v498_v27 = vpop.xlane.xlu2 %497 }
 0x23a   :  { %v538_v28 = vadd.f32 %v758_v15, %v498_v27 }
 0x23c   :  { %581 = vperm.xlu2 %752, %v538_v28  }
 0x23d   :  { %v501_v29 = vpop.xlane.xlu0 %500 }
 0x23e   :  { %v539_v30 = vadd.f32 %v758_v15, %v501_v29 }
 0x240   :  { %584 = vperm.xlu1 %751, %v539_v30   ;;  %v664_v30 = vadd.s32 4294967192, %v1057_v51 }
 0x245   :  { %v504_v31 = vpop.xlane.xlu1 %503 }
 0x246   :  { %v540_v32 = vadd.f32 %v758_v15, %v504_v31 }
 0x248   :  { %587 = vperm.xlu2 %752, %v540_v32  }
 0x24d   :  { %v507_v33 = vpop.xlane.xlu2 %506 }
 0x24e   :  { %v541_v34 = vadd.f32 %v758_v15, %v507_v33 }
 0x250   :  { %590 = vperm.xlu1 %751, %v541_v34  }
 0x255   :  { %v510_v35 = vpop.xlane.xlu0 %509 }
 0x256   :  { %v542_v36 = vadd.f32 %v758_v15, %v510_v35  ;;  %v668_v35 = vadd.s32 4294967184, %v1057_v51 }
 0x258   :  { %593 = vperm.xlu0 %753, %v542_v36  }
 0x25d   :  { %v513_v37 = vpop.xlane.xlu1 %512 }
 0x25e   :  { %v543_v38 = vadd.f32 %v758_v15, %v513_v37 }
 0x260   :  { %596 = vperm.xlu2 %752, %v543_v38  }
 0x265   :  { %v516_v39 = vpop.xlane.xlu2 %515 }
 0x266   :  { %v544_v41 = vadd.f32 %v758_v15, %v516_v39  ;;  %v672_v39 = vadd.s32 4294967176, %v1057_v51 }
 0x268   :  { %605 = vperm.xlu2 %752, %v546_v40   ;;  %599 = vperm.xlu1 %751, %v544_v41  }
 0x26d   :  { %v519_v42 = vpop.xlane.xlu0 %518 }
 0x26e   :  { %v545_v44 = vadd.f32 %v758_v15, %v519_v42 }
 0x270   :  { %608 = vperm.xlu1 %751, %v547_v43   ;;  %602 = vperm.xlu0 %753, %v545_v44  }
 0x272   :  { %v570_v46 = vpop.permute.xlu2 %569 }
 0x273   :  { %v617_v62 = vperm.slane %v570_v46, %v616_v54 }
 0x278   :  { %611 = vperm.xlu0 %753, %v548_v45  }
 0x282   :  { %v567_v47 = vpop.permute.xlu1 %566 }
 0x283   :  { %v615_v57 = vperm.slane %v567_v47, %v1057_v51 }
 0x285   :  { %v619_v1 = vsel %vm618_vm4, %v617_v62, %v615_v57 }
 0x28a   :  { %v576_v48 = vpop.permute.xlu2 %575 }
 0x28b   :  { %v625_v5 = vperm.slane %v576_v48, %v624_v63 }
 0x292   :  { %v573_v55 = vpop.permute.xlu0 %572 }
 0x293   :  { %v621_v59 = vperm.slane %v573_v55, %v620_v53 }
 0x295   :  { %v623_v2 = vsel %vm622_vm5, %v621_v59, %v619_v1 }
 0x296   :  { %v582_v52 = vpop.permute.xlu2 %581  ;;  %v627_v8 = vsel %vm626_vm6, %v625_v5, %v623_v2 }
 0x297   :  { %v633_v12 = vperm.slane %v582_v52, %v632_v6 }
 0x2a2   :  { %v588_v0 = vpop.permute.xlu2 %587 }
 0x2a3   :  { %v641_v20 = vperm.slane %v588_v0, %v640_v13 }
 0x2a6   :  { %v579_v50 = vpop.permute.xlu1 %578 }
 0x2a7   :  { %v629_v3 = vperm.slane %v579_v50, %v628_v60 }
 0x2a9   :  { %v631_v9 = vsel %vm630_vm7, %v629_v3, %v627_v8 }
 0x2aa   :  { %v635_v17 = vsel %vm634_vm8, %v633_v12, %v631_v9 }
 0x2b2   :  { %v585_v56 = vpop.permute.xlu1 %584 }
 0x2b3   :  { %v637_v10 = vperm.slane %v585_v56, %v636_v4 }
 0x2b5   :  { %v639_v18 = vsel %vm638_vm9, %v637_v10, %v635_v17 }
 0x2b6   :  { %v643_v58 = vsel %vm642_vm10, %v641_v20, %v639_v18 }
 0x2ba   :  { %v597_v15 = vpop.permute.xlu2 %596 }
 0x2bb   :  { %v653_v28 = vperm.slane %v597_v15, %v652_v24 }
 0x2c2   :  { %v591_v7 = vpop.permute.xlu1 %590  ;;  %v606_v32 = vpop.permute.xlu2 %605 }
 0x2c3   :  { %v645_v19 = vperm.slane %v591_v7, %v644_v11  ;;  %v665_v37 = vperm.slane %v606_v32, %v664_v30 }
 0x2c5   :  { %v647_v61 = vsel %vm646_vm11, %v645_v19, %v643_v58 }
 0x2ca   :  { %v594_v16 = vpop.permute.xlu0 %593 }
 0x2cb   :  { %v649_v21 = vperm.slane %v594_v16, %v648_v14 }
 0x2cd   :  { %v651_v26 = vsel %vm650_vm12, %v649_v21, %v647_v61 }
 0x2ce   :  { %v655_v33 = vsel %vm654_vm13, %v653_v28, %v651_v26 }
 0x2da   :  { %v600_v23 = vpop.permute.xlu1 %599 }
 0x2db   :  { %v657_v27 = vperm.slane %v600_v23, %v656_v22 }
 0x2dd   :  { %v659_v34 = vsel %vm658_vm14, %v657_v27, %v655_v33 }
 0x2e2   :  { %v603_v29 = vpop.permute.xlu0 %602  ;;  %v609_v38 = vpop.permute.xlu1 %608 }
 0x2e3   :  { %v661_v31 = vperm.slane %v603_v29, %v660_v25  ;;  %v669_v41 = vperm.slane %v609_v38, %v668_v35 }
 0x2e5   :  { %v663_v36 = vsel %vm662_vm15, %v661_v31, %v659_v34 }
 0x2e6   :  { %v667_v40 = vsel %vm666_vm0, %v665_v37, %v663_v36 }
 0x2e7   :  { %v671_v44 = vsel %vm670_vm1, %v669_v41, %v667_v40 }
 0x2ea   :  { %v612_v42 = vpop.permute.xlu0 %611 }
 0x2eb   :  { %v673_v43 = vperm.slane %v612_v42, %v672_v39 }
 0x2ed   :  { %v675_v45 = vsel %vm674_vm2, %v673_v43, %v671_v44 }
 0x2ee   :  { %677 = vst [vmem:[#allocation3] sm:$0x1] %v675_v45 }
 0x2ef   :  { %688 = dma.vmem_to_hbm [thread:$0]  %s684_s7, 16, %s686_s16, [#allocation4]  }
 0x2f0   :  { %783 = dma.done.wait [#allocation4], 16  }
 0x2f1   :  { %784 = vsyncadd [#allocation4], 4294967280 }
 0x2f2   :  { %693 = vsyncpa [#allocation4], 1 }

</bundles_post_ra>
